<compile_context>
chip_gen: v5e
topology: v5e:2x2
jax: 0.10.0
libtpu: 0.0.40
codegen_flags: <defaults>
</compile_context>

<pallas_src>
import math

import jax
import jax.numpy as jnp
from jax import lax
from jax.experimental import pallas as pl
from jax.experimental.pallas import tpu as pltpu


# --------------------------------------------------------------------------- #
# Tiling helpers
# --------------------------------------------------------------------------- #
def _round_up(x: int, m: int) -> int:
    return ((x + m - 1) // m) * m


def _pick_tile(dim: int, pref: int, align: int):
    """Return (padded_dim, tile) with tile % align == 0 and tile | padded_dim.

    Keeps the tile close to `pref` while keeping padding close to `align`
    granularity (don't round K/N all the way up to the tile unless needed).
    """
    pref = max(align, (pref // align) * align)
    if dim <= pref:
        p = _round_up(dim, align)
        return p, p
    p_min = _round_up(dim, align)
    t_floor = max(align, (pref // 4 // align) * align)
    best_p, best_t = None, None
    t = pref
    while t >= t_floor:
        p = _round_up(dim, t)
        if best_p is None or p < best_p:
            best_p, best_t = p, t
            if p == p_min:  # already minimal (align-granular) padding
                break
        t -= align
    return best_p, best_t


def _largest_aligned_divisor(p: int, cap: int, align: int) -> int:
    """Largest t <= cap with t % align == 0 and p % t == 0 (assumes p % align == 0)."""
    t = (min(cap, p) // align) * align
    while t > align:
        if p % t == 0:
            return t
        t -= align
    return align


# --------------------------------------------------------------------------- #
# Kernel
# --------------------------------------------------------------------------- #
def _lora_kernel(x_ref, w_ref, xa_ref, b_ref, bias_ref, o_ref, *scratch):
    """One (i, j, k) grid step.

    x_ref    : (tm, tk)     activation tile (compute dtype)
    w_ref    : (tn, tk)     frozen weight tile, (out, in) layout
    xa_ref   : (tm, r_pad)  pre-computed, pre-scaled  x @ (alpha/r * A)^T  tile
    b_ref    : (tn, r_pad)  LoRA B tile, (out, rank) layout
    bias_ref : (1, tn)      bias tile (f32)
    o_ref    : (tm, tn)     output tile (resident across k)
    scratch  : ()           for f32 outputs -> accumulate straight into o_ref
               (acc_ref,)   f32 VMEM accumulator for narrow output dtypes
    """
    acc_ref = scratch[0] if scratch else o_ref
    k = pl.program_id(2)

    @pl.when(k == 0)
    def _():
        acc_ref[...] = jnp.zeros_like(acc_ref)

    # Contract on in_features of the un-transposed (out, in) weight tile.
    dn = (((1,), (1,)), ((), ()))
    acc_ref[...] += lax.dot_general(
        x_ref[...], w_ref[...], dn, preferred_element_type=jnp.float32)

    @pl.when(k == pl.num_programs(2) - 1)
    def _():
        # LoRA epilogue: tiny (tm, r) x (tn, r) matmul, once per (i, j) tile.
        lora = lax.dot_general(
            xa_ref[...], b_ref[...], dn, preferred_element_type=jnp.float32)
        y = acc_ref[...] + lora + bias_ref[...]
        o_ref[...] = y.astype(o_ref.dtype)


# --------------------------------------------------------------------------- #
# One-time (load-time) parameter preparation
# --------------------------------------------------------------------------- #
def prepare_lora_params(weight, lora_A, lora_B, bias, lora_alpha, rank,
                        *, compute_dtype=None, tn=1024, tk=1024):
    """Pad / cast the frozen and LoRA parameters ONCE (at model-load time).

    weight : (out, in)   lora_A : (rank, in)   lora_B : (out, rank)   bias: (out,)
    The LoRA scaling alpha/rank is folded into lora_A here.
    """
    out_features, in_features = weight.shape
    if bias is None:
        bias = jnp.zeros((out_features,), dtype=weight.dtype)
    if compute_dtype is None:
        compute_dtype = weight.dtype
    compute_dtype = jnp.dtype(compute_dtype)

    n_pad, tn_eff = _pick_tile(out_features, tn, 128)
    k_pad, tk_eff = _pick_tile(in_features, tk, 128)
    sub = {1: 32, 2: 16}.get(compute_dtype.itemsize, 8)
    r_pad = _round_up(rank, sub)
    scaling = float(lora_alpha) / float(rank)

    wp = weight.astype(compute_dtype)
    ap = (lora_A.astype(jnp.float32) * scaling).astype(compute_dtype)
    bp = lora_B.astype(compute_dtype)
    biasp = bias.astype(jnp.float32).reshape(1, -1)

    if n_pad != out_features or k_pad != in_features:
        wp = jnp.pad(wp, ((0, n_pad - out_features), (0, k_pad - in_features)))
    if r_pad != rank or k_pad != in_features:
        ap = jnp.pad(ap, ((0, r_pad - rank), (0, k_pad - in_features)))
    if n_pad != out_features or r_pad != rank:
        bp = jnp.pad(bp, ((0, n_pad - out_features), (0, r_pad - rank)))
    if n_pad != out_features:
        biasp = jnp.pad(biasp, ((0, 0), (0, n_pad - out_features)))

    return dict(weight=wp, lora_A=ap, lora_B=bp, bias=biasp,
                in_features=in_features, out_features=out_features,
                rank=rank, n_pad=n_pad, k_pad=k_pad, r_pad=r_pad,
                tn=tn_eff, tk=tk_eff, compute_dtype=compute_dtype)


# --------------------------------------------------------------------------- #
# Forward
# --------------------------------------------------------------------------- #
def lora_forward(x, params, *, tm=256):
    """x: (..., in_features) -> (..., out_features)."""
    in_features = params["in_features"]
    out_features = params["out_features"]
    n_pad, k_pad, r_pad = params["n_pad"], params["k_pad"], params["r_pad"]
    tn_eff, tk_eff = params["tn"], params["tk"]
    cdt = params["compute_dtype"]
    out_dtype = x.dtype

    lead_shape = x.shape[:-1]
    x2 = x.reshape(-1, in_features)
    m = x2.shape[0]
    m_pad, tm_eff = _pick_tile(m, tm, 8)

    # ---- activation padding (guarded) + compute-dtype cast -----------------
    x2c = x2.astype(cdt)
    if m_pad != m or k_pad != in_features:
        x2c = jnp.pad(x2c, ((0, m_pad - m), (0, k_pad - in_features)))

    # ---- LoRA down-projection once per call (opt #1b): (m, rank) is tiny ---
    dn = (((1,), (1,)), ((), ()))
    xa = lax.dot_general(x2c, params["lora_A"], dn,
                         preferred_element_type=jnp.float32).astype(cdt)

    # ---- grid -----------------------------------------------------------------
    grid_m = m_pad // tm_eff
    grid_n = n_pad // tn_eff
    # v7x: keep >=2 parallel tiles so both TensorCores get work (decode case).
    if grid_m == 1 and grid_n == 1 and n_pad >= 256:
        tn_eff = _largest_aligned_divisor(n_pad, n_pad // 2, 128)
        grid_n = n_pad // tn_eff
    grid_k = k_pad // tk_eff
    grid = (grid_m, grid_n, grid_k)

    # f32 outputs accumulate directly into the resident output tile.
    use_scratch = jnp.dtype(out_dtype) != jnp.dtype(jnp.float32)
    scratch_shapes = (
        [pltpu.VMEM((tm_eff, tn_eff), jnp.float32)] if use_scratch else [])

    cds = jnp.dtype(cdt).itemsize
    ods = jnp.dtype(out_dtype).itemsize

    cost = pl.CostEstimate(
        flops=int(2 * m_pad * n_pad * k_pad + 2 * m_pad * n_pad * r_pad),
        transcendentals=0,
        bytes_accessed=int(cds * (m_pad * k_pad + n_pad * k_pad
                                  + m_pad * r_pad + n_pad * r_pad)
                           + 4 * n_pad + ods * m_pad * n_pad),
    )

    # Scoped-VMEM budget: raise past v5e's 16 MiB / v6e-v7x's 32 MiB defaults,
    # but stay comfortably under v7x's 64 MiB physical VMEM per TensorCore.
    r_lanes = _round_up(r_pad, 128)  # narrow-lane buffers pad to 128 lanes
    vmem_est = (2 * cds * (tm_eff * tk_eff + tn_eff * tk_eff
                           + tm_eff * r_lanes + tn_eff * r_lanes)
                + 2 * 4 * 8 * tn_eff
                + 2 * ods * tm_eff * tn_eff
                + (4 * tm_eff * tn_eff if use_scratch else 0))
    vmem_limit = max(32 * 1024 * 1024,
                     min(48 * 1024 * 1024, int(vmem_est * 1.5) + (4 << 20)))

    out = pl.pallas_call(
        _lora_kernel,
        out_shape=jax.ShapeDtypeStruct((m_pad, n_pad), out_dtype),
        grid_spec=pltpu.PrefetchScalarGridSpec(
            num_scalar_prefetch=0,
            grid=grid,
            in_specs=[
                pl.BlockSpec((tm_eff, tk_eff), lambda i, j, k: (i, k)),  # x
                pl.BlockSpec((tn_eff, tk_eff), lambda i, j, k: (j, k)),  # W
                pl.BlockSpec((tm_eff, r_pad), lambda i, j, k: (i, 0)),   # x@A^T
                pl.BlockSpec((tn_eff, r_pad), lambda i, j, k: (j, 0)),   # B
                pl.BlockSpec((1, tn_eff), lambda i, j, k: (0, j)),       # bias
            ],
            out_specs=pl.BlockSpec((tm_eff, tn_eff), lambda i, j, k: (i, j)),
            scratch_shapes=scratch_shapes,
        ),
        compiler_params=pltpu.CompilerParams(
            dimension_semantics=("parallel", "parallel", "arbitrary"),
            vmem_limit_bytes=vmem_limit,
        ),
        cost_estimate=cost,
    )(x2c, params["weight"], xa, params["lora_B"], params["bias"])

    out = out[:m, :out_features]
    return out.reshape(*lead_shape, out_features)


# --------------------------------------------------------------------------- #
# Self-test
# --------------------------------------------------------------------------- #
if __name__ == "__main__":
    key = jax.random.PRNGKey(0)
    k_x, k_w, k_a, k_b, k_bias, k_x3, k_w3, k_a3, k_b3, k_bias3 = (
        jax.random.split(key, 10))

    # ---- config 1: module-sized small problem ------------------------------
    in_features, out_features, rank, lora_alpha = 32, 32, 4, 8
    batch, seq = 2, 8
    scaling = lora_alpha / rank

    x = jax.random.normal(k_x, (batch, seq, in_features), dtype=jnp.float32)
    weight = jax.random.normal(k_w, (out_features, in_features),
                               dtype=jnp.float32) * 0.1
    bias = jax.random.normal(k_bias, (out_features,), dtype=jnp.float32) * 0.1
    bound = 1.0 / math.sqrt(in_features)
    lora_A = jax.random.uniform(k_a, (rank, in_features), dtype=jnp.float32,
                                minval=-bound, maxval=bound)
    lora_B0 = jnp.zeros((out_features, rank), dtype=jnp.float32)  # module init
    lora_Br = jax.random.normal(k_b, (out_features, rank),
                                dtype=jnp.float32) * 0.1

    def ref(xv, W, A, B, b):
        return xv @ W.T + (xv @ A.T @ B.T) * scaling + b

    # (a) f32 compute path (accumulates directly into the f32 output tile).
    for lora_B in (lora_B0, lora_Br):
        p = prepare_lora_params(weight, lora_A, lora_B, bias, lora_alpha, rank,
                                compute_dtype=jnp.float32)
        y = jax.block_until_ready(lora_forward(x, p))
        y_ref = ref(x, weight, lora_A, lora_B, bias)
        assert y.shape == (batch, seq, out_features)
        assert jnp.allclose(y, y_ref, atol=2e-3, rtol=2e-3), float(
            jnp.max(jnp.abs(y - y_ref)))

    # (b) bf16 compute path (half W HBM bytes, f32 accumulation).
    p = prepare_lora_params(weight, lora_A, lora_Br, bias, lora_alpha, rank,
                            compute_dtype=jnp.bfloat16)
    y = jax.block_until_ready(lora_forward(x, p))
    y_ref = ref(x, weight, lora_A, lora_Br, bias)
    assert jnp.allclose(y, y_ref, atol=5e-2, rtol=5e-2), float(
        jnp.max(jnp.abs(y - y_ref)))

    # ---- config 2: non-aligned dims, real 3-D grid (small tile prefs) ------
    in2, out2 = 200, 384
    x3 = jax.random.normal(k_x3, (3, 5, in2), dtype=jnp.float32)
    weight2 = jax.random.normal(k_w3, (out2, in2), dtype=jnp.float32) * 0.05
    bias2 = jax.random.normal(k_bias3, (out2,), dtype=jnp.float32) * 0.1
    bound2 = 1.0 / math.sqrt(in2)
    A2 = jax.random.uniform(k_a3, (rank, in2), dtype=jnp.float32,
                            minval=-bound2, maxval=bound2)
    B2 = jax.random.normal(k_b3, (out2, rank), dtype=jnp.float32) * 0.1

    def ref2(xv):
        return xv @ weight2.T + (xv @ A2.T @ B2.T) * scaling + bias2

    # f32, multi-tile grid (grid_m=2, grid_n=3, grid_k=2), no scratch.
    p = prepare_lora_params(weight2, A2, B2, bias2, lora_alpha, rank,
                            compute_dtype=jnp.float32, tn=128, tk=128)
    y = jax.block_until_ready(lora_forward(x3, p, tm=8))
    y_ref = ref2(x3)
    assert y.shape == (3, 5, out2)
    assert jnp.allclose(y, y_ref, atol=2e-3, rtol=2e-3), float(
        jnp.max(jnp.abs(y - y_ref)))

    # bf16 activations + bf16 compute -> bf16 output (scratch accumulator path).
    x3b = x3.astype(jnp.bfloat16)
    p = prepare_lora_params(weight2, A2, B2, bias2, lora_alpha, rank,
                            compute_dtype=jnp.bfloat16, tn=128, tk=128)
    y = jax.block_until_ready(lora_forward(x3b, p, tm=8))
    y_ref = ref2(x3b.astype(jnp.float32))
    assert y.dtype == jnp.bfloat16
    assert jnp.allclose(y.astype(jnp.float32), y_ref, atol=6e-2, rtol=6e-2), \
        float(jnp.max(jnp.abs(y.astype(jnp.float32) - y_ref)))

    print("KERNEL_OK")
</pallas_src>

<mosaic_0001>
module attributes {stable_mosaic.version = 11 : i64} {
  func.func @_lora_kernel(%arg0: i32, %arg1: i32, %arg2: i32, %arg3: memref<16x128xf32, #tpu.memory_space<vmem>>, %arg4: memref<128x128xf32, #tpu.memory_space<vmem>>, %arg5: memref<16x8xf32, #tpu.memory_space<vmem>>, %arg6: memref<128x8xf32, #tpu.memory_space<vmem>>, %arg7: memref<1x128xf32, #tpu.memory_space<vmem>>, %arg8: memref<16x128xf32, #tpu.memory_space<vmem>>) attributes {dimension_semantics = [#tpu.dimension_semantics<parallel>, #tpu.dimension_semantics<parallel>, #tpu.dimension_semantics<arbitrary>], iteration_bounds = array<i64: 1, 1, 1>, scalar_prefetch = 0 : i64, scratch_operands = 0 : i64, tpu.core_type = #tpu.core_type<tc>, window_params = [{transform_indices = @transform_0, window_bounds = array<i64: 16, 128>}, {transform_indices = @transform_1, window_bounds = array<i64: 128, 128>}, {transform_indices = @transform_2, window_bounds = array<i64: 16, 8>}, {transform_indices = @transform_3, window_bounds = array<i64: 128, 8>}, {transform_indices = @transform_4, window_bounds = array<i64: 1, 128>}, {transform_indices = @transform_5, window_bounds = array<i64: 16, 128>}]} {
    %c0_i32 = arith.constant 0 : i32
    %0 = arith.cmpi eq, %arg2, %c0_i32 : i32
    %1 = arith.extui %0 : i1 to i32
    %c0_i32_0 = arith.constant 0 : i32
    %2 = arith.cmpi ne, %1, %c0_i32_0 : i32
    scf.if %2 {
      %cst_10 = arith.constant 0.000000e+00 : f32
      %12 = vector.broadcast %cst_10 : f32 to vector<16x128xf32>
      %c0_11 = arith.constant 0 : index
      %c0_12 = arith.constant 0 : index
      %13 = vector.load %arg8[%c0_11, %c0_12] : memref<16x128xf32, #tpu.memory_space<vmem>>, vector<16x128xf32>
      tpu.vector_store %arg8[%c0_11, %c0_12], %12 {strides = array<i32>} : memref<16x128xf32, #tpu.memory_space<vmem>>, vector<16x128xf32>,
    } else {
    }
    %c0 = arith.constant 0 : index
    %c0_1 = arith.constant 0 : index
    %3 = vector.load %arg8[%c0, %c0_1] : memref<16x128xf32, #tpu.memory_space<vmem>>, vector<16x128xf32>
    %c0_2 = arith.constant 0 : index
    %c0_3 = arith.constant 0 : index
    %4 = vector.load %arg3[%c0_2, %c0_3] : memref<16x128xf32, #tpu.memory_space<vmem>>, vector<16x128xf32>
    %c0_4 = arith.constant 0 : index
    %c0_5 = arith.constant 0 : index
    %5 = vector.load %arg4[%c0_4, %c0_5] : memref<128x128xf32, #tpu.memory_space<vmem>>, vector<128x128xf32>
    %cst = arith.constant dense<0.000000e+00> : vector<16x128xf32>
    %6 = tpu.matmul %4, %5, %cst {dimension_numbers = #tpu.dot_dimension_numbers<[1], [1], [0], [0], [0, 0, 1, 0], [], []>} : vector<16x128xf32>, vector<128x128xf32>, vector<16x128xf32> -> vector<16x128xf32>
    %7 = arith.addf %3, %6 : vector<16x128xf32>
    %c0_6 = arith.constant 0 : index
    %c0_7 = arith.constant 0 : index
    %8 = vector.load %arg8[%c0_6, %c0_7] : memref<16x128xf32, #tpu.memory_space<vmem>>, vector<16x128xf32>
    tpu.vector_store %arg8[%c0_6, %c0_7], %7 {strides = array<i32>} : memref<16x128xf32, #tpu.memory_space<vmem>>, vector<16x128xf32>,
    %c0_i32_8 = arith.constant 0 : i32
    %9 = arith.cmpi eq, %arg2, %c0_i32_8 : i32
    %10 = arith.extui %9 : i1 to i32
    %c0_i32_9 = arith.constant 0 : i32
    %11 = arith.cmpi ne, %10, %c0_i32_9 : i32
    scf.if %11 {
      %c0_10 = arith.constant 0 : index
      %c0_11 = arith.constant 0 : index
      %12 = vector.load %arg5[%c0_10, %c0_11] : memref<16x8xf32, #tpu.memory_space<vmem>>, vector<16x8xf32>
      %c0_12 = arith.constant 0 : index
      %c0_13 = arith.constant 0 : index
      %13 = vector.load %arg6[%c0_12, %c0_13] : memref<128x8xf32, #tpu.memory_space<vmem>>, vector<128x8xf32>
      %cst_14 = arith.constant dense<0.000000e+00> : vector<16x128xf32>
      %14 = tpu.matmul %12, %13, %cst_14 {dimension_numbers = #tpu.dot_dimension_numbers<[1], [1], [0], [0], [0, 0, 1, 0], [], []>} : vector<16x8xf32>, vector<128x8xf32>, vector<16x128xf32> -> vector<16x128xf32>
      %c0_15 = arith.constant 0 : index
      %c0_16 = arith.constant 0 : index
      %15 = vector.load %arg8[%c0_15, %c0_16] : memref<16x128xf32, #tpu.memory_space<vmem>>, vector<16x128xf32>
      %16 = arith.addf %15, %14 : vector<16x128xf32>
      %c0_17 = arith.constant 0 : index
      %c0_18 = arith.constant 0 : index
      %17 = vector.load %arg7[%c0_17, %c0_18] : memref<1x128xf32, #tpu.memory_space<vmem>>, vector<1x128xf32>
      %18 = vector.broadcast %17 : vector<1x128xf32> to vector<16x128xf32>
      %19 = arith.addf %16, %18 : vector<16x128xf32>
      %c0_19 = arith.constant 0 : index
      %c0_20 = arith.constant 0 : index
      %20 = vector.load %arg8[%c0_19, %c0_20] : memref<16x128xf32, #tpu.memory_space<vmem>>, vector<16x128xf32>
      tpu.vector_store %arg8[%c0_19, %c0_20], %19 {strides = array<i32>} : memref<16x128xf32, #tpu.memory_space<vmem>>, vector<16x128xf32>,
    } else {
    }
    return
  }
  func.func @transform_0(%arg0: i32, %arg1: i32, %arg2: i32) -> (i32, i32) {
    %c0_i32 = arith.constant 0 : i32
    return %arg0, %arg2 : i32, i32
  }
  func.func @transform_1(%arg0: i32, %arg1: i32, %arg2: i32) -> (i32, i32) {
    %c0_i32 = arith.constant 0 : i32
    return %arg1, %arg2 : i32, i32
  }
  func.func @transform_2(%arg0: i32, %arg1: i32, %arg2: i32) -> (i32, i32) {
    %c0_i32 = arith.constant 0 : i32
    %c0_i32_0 = arith.constant 0 : i32
    return %arg0, %c0_i32 : i32, i32
  }
  func.func @transform_3(%arg0: i32, %arg1: i32, %arg2: i32) -> (i32, i32) {
    %c0_i32 = arith.constant 0 : i32
    %c0_i32_0 = arith.constant 0 : i32
    return %arg1, %c0_i32 : i32, i32
  }
  func.func @transform_4(%arg0: i32, %arg1: i32, %arg2: i32) -> (i32, i32) {
    %c0_i32 = arith.constant 0 : i32
    %c0_i32_0 = arith.constant 0 : i32
    return %c0_i32, %arg1 : i32, i32
  }
  func.func @transform_5(%arg0: i32, %arg1: i32, %arg2: i32) -> (i32, i32) {
    %c0_i32 = arith.constant 0 : i32
    return %arg0, %arg1 : i32, i32
  }
}

</mosaic_0001>

<bundles_post_ra>
// kernel: tpu_custom_call.1
= control target key start
LH: loop header
LB: loop body
LE: loop exit
PB: predicated region body
PF: predicated region fallthrough
CT: control target
= control target key end

     0   :  { %vm95_vm0 = vcmask 64512   ;;  %s465_s0 = inlined_call_operand.vmem [shape: f32[16,128], index: 0, kind: input, shape index: {}]   ;;  %s466_s1 = inlined_call_operand.vmem [shape: f32[128,128], index: 1, kind: input, shape index: {}]   ;;  %s467_s2 = inlined_call_operand.vmem [shape: f32[16,8], index: 2, kind: input, shape index: {}]   ;;  %s468_s3 = inlined_call_operand.vmem [shape: f32[128,8], index: 3, kind: input, shape index: {}]   ;;  %s469_s4 = inlined_call_operand.vmem [shape: f32[1,128], index: 4, kind: input, shape index: {}]   ;;  %s470_s5 = inlined_call_operand.hbm [shape: f32[16,128], index: 5, kind: output, shape index: {}]  }
   0x1   :  { %v46_v0 = vld [vmem:[%s466_s1 + $0x78] sm:$0xff]  ;;  %v45_v2 = vld [vmem:[%s466_s1 + $0x70] sm:$0xff]  ;;  %v44_v4 = vld [vmem:[%s466_s1 + $0x68] sm:$0xff] }
   0x2   :  { %221 = vmatpush.xpose.msra.mxu2 %v46_v0  ;;  %47 = vmatpush.xpose.msra.mxu0 %v46_v0  ;;  %v94_v1 = vld [vmem:[%s468_s3 + $0x78] sm:$0xff]  ;;  %v93_v3 = vld [vmem:[%s468_s3 + $0x70] sm:$0xff]  ;;  %v92_v5 = vld [vmem:[%s468_s3 + $0x68] sm:$0xff] }
   0x3   :  { %237 = vmatpush.xpose.msk.msra.mxu3 %vm95_vm0, %v94_v1  ;;  %203 = vmatpush.xpose.msk.msra.mxu1 %vm95_vm0, %v94_v1 }
   0x6   :  { %222 = vmatpush.xpose.msra.mxu2 %v45_v2  ;;  %48 = vmatpush.xpose.msra.mxu0 %v45_v2 }
   0x7   :  { %238 = vmatpush.xpose.msk.msra.mxu3 %vm95_vm0, %v93_v3  ;;  %204 = vmatpush.xpose.msk.msra.mxu1 %vm95_vm0, %v93_v3 }
   0x8   :  { %10 = vsyncpa [#allocation3], 0  ;;  %v43_v6 = vld [vmem:[%s466_s1 + $0x60] sm:$0xff]  ;;  %v42_v8 = vld [vmem:[%s466_s1 + $0x58] sm:$0xff]  ;;  %s284_s14 = smov [#allocation2]   ;;  %s191_s17 = sshll.u32 %s470_s5, 4  ;;  %s192_s17 = int_to_ptr.hbm [resolvable:$true] %s191_s17 }
   0x9   :  { %v91_v7 = vld [vmem:[%s468_s3 + $0x60] sm:$0xff]  ;;  %v90_v9 = vld [vmem:[%s468_s3 + $0x58] sm:$0xff]  ;;  %v41_v10 = vld [vmem:[%s466_s1 + $0x50] sm:$0xff]  ;;  %s189_s15 = sshll.u32 %s284_s14, 4  ;;  %s285_s18 = smov 128   ;;  %s190_s15 = int_to_ptr.vmem [resolvable:$true] %s189_s15 }
   0xa   :  { %223 = vmatpush.xpose.msra.mxu2 %v44_v4  ;;  %49 = vmatpush.xpose.msra.mxu0 %v44_v4  ;;  %v89_v11 = vld [vmem:[%s468_s3 + $0x50] sm:$0xff]  ;;  %v40_v12 = vld [vmem:[%s466_s1 + $0x48] sm:$0xff]  ;;  %v39_v14 = vld [vmem:[%s466_s1 + $0x40] sm:$0xff]  ;;  %s286_s19 = smov 8  }
   0xb   :  { %239 = vmatpush.xpose.msk.msra.mxu3 %vm95_vm0, %v92_v5  ;;  %205 = vmatpush.xpose.msk.msra.mxu1 %vm95_vm0, %v92_v5  ;;  %v88_v13 = vld [vmem:[%s468_s3 + $0x48] sm:$0xff]  ;;  %v87_v15 = vld [vmem:[%s468_s3 + $0x40] sm:$0xff]  ;;  %v38_v16 = vld [vmem:[%s466_s1 + $0x38] sm:$0xff] }
   0xc   :  { %v86_v17 = vld [vmem:[%s468_s3 + $0x38] sm:$0xff]  ;;  %v37_v18 = vld [vmem:[%s466_s1 + $0x30] sm:$0xff]  ;;  %v36_v20 = vld [vmem:[%s466_s1 + $0x28] sm:$0xff] }
   0xd   :  { %v85_v19 = vld [vmem:[%s468_s3 + $0x30] sm:$0xff]  ;;  %v84_v21 = vld [vmem:[%s468_s3 + $0x28] sm:$0xff]  ;;  %v35_v22 = vld [vmem:[%s466_s1 + $0x20] sm:$0xff] }
   0xe   :  { %224 = vmatpush.xpose.msra.mxu2 %v43_v6  ;;  %50 = vmatpush.xpose.msra.mxu0 %v43_v6  ;;  %v83_v23 = vld [vmem:[%s468_s3 + $0x20] sm:$0xff]  ;;  %v34_v24 = vld [vmem:[%s466_s1 + $0x18] sm:$0xff]  ;;  %v33_v26 = vld [vmem:[%s466_s1 + $0x10] sm:$0xff] }
   0xf   :  { %240 = vmatpush.xpose.msk.msra.mxu3 %vm95_vm0, %v91_v7  ;;  %206 = vmatpush.xpose.msk.msra.mxu1 %vm95_vm0, %v91_v7  ;;  %v82_v25 = vld [vmem:[%s468_s3 + $0x18] sm:$0xff]  ;;  %v81_v27 = vld [vmem:[%s468_s3 + $0x10] sm:$0xff]  ;;  %v32_v28 = vld [vmem:[%s466_s1 + $0x8] sm:$0xff] }
  0x10   :  { %v80_v29 = vld [vmem:[%s468_s3 + $0x8] sm:$0xff]  ;;  %v31_v30 = vld [vmem:[%s466_s1] sm:$0xff] }
  0x11   :  { %v79_v31 = vld [vmem:[%s468_s3] sm:$0xff]  ;;  %v30_v32 = vld [vmem:[%s465_s0 + $0x8] sm:$0xff] }
  0x12   :  { %225 = vmatpush.xpose.msra.mxu2 %v42_v8  ;;  %51 = vmatpush.xpose.msra.mxu0 %v42_v8  ;;  %v29_v33 = vld [vmem:[%s465_s0] sm:$0xff]  ;;  %v78_v34 = vld [vmem:[%s467_s2 + $0x8] sm:$0xff] }
  0x13   :  { %241 = vmatpush.xpose.msk.msra.mxu3 %vm95_vm0, %v90_v9  ;;  %207 = vmatpush.xpose.msk.msra.mxu1 %vm95_vm0, %v90_v9  ;;  %v77_v35 = vld [vmem:[%s467_s2] sm:$0xff] }
  0x14   :  { %v257_v38 = vld [vmem:[%s469_s4] ss:$0 sm:$0xff] }
  0x16   :  { %226 = vmatpush.xpose.msra.mxu2 %v41_v10  ;;  %52 = vmatpush.xpose.msra.mxu0 %v41_v10 }
  0x17   :  { %242 = vmatpush.xpose.msk.msra.mxu3 %vm95_vm0, %v89_v11  ;;  %208 = vmatpush.xpose.msk.msra.mxu1 %vm95_vm0, %v89_v11 }
  0x1a   :  { %227 = vmatpush.xpose.msra.mxu2 %v40_v12  ;;  %53 = vmatpush.xpose.msra.mxu0 %v40_v12 }
  0x1b   :  { %243 = vmatpush.xpose.msk.msra.mxu3 %vm95_vm0, %v88_v13  ;;  %209 = vmatpush.xpose.msk.msra.mxu1 %vm95_vm0, %v88_v13 }
  0x1e   :  { %228 = vmatpush.xpose.msra.mxu2 %v39_v14  ;;  %54 = vmatpush.xpose.msra.mxu0 %v39_v14 }
  0x1f   :  { %244 = vmatpush.xpose.msk.msra.mxu3 %vm95_vm0, %v87_v15  ;;  %210 = vmatpush.xpose.msk.msra.mxu1 %vm95_vm0, %v87_v15 }
  0x22   :  { %229 = vmatpush.xpose.msra.mxu2 %v38_v16  ;;  %55 = vmatpush.xpose.msra.mxu0 %v38_v16 }
  0x23   :  { %245 = vmatpush.xpose.msk.msra.mxu3 %vm95_vm0, %v86_v17  ;;  %211 = vmatpush.xpose.msk.msra.mxu1 %vm95_vm0, %v86_v17 }
  0x26   :  { %230 = vmatpush.xpose.msra.mxu2 %v37_v18  ;;  %56 = vmatpush.xpose.msra.mxu0 %v37_v18 }
  0x27   :  { %246 = vmatpush.xpose.msk.msra.mxu3 %vm95_vm0, %v85_v19  ;;  %212 = vmatpush.xpose.msk.msra.mxu1 %vm95_vm0, %v85_v19 }
  0x2a   :  { %231 = vmatpush.xpose.msra.mxu2 %v36_v20  ;;  %57 = vmatpush.xpose.msra.mxu0 %v36_v20 }
  0x2b   :  { %247 = vmatpush.xpose.msk.msra.mxu3 %vm95_vm0, %v84_v21  ;;  %213 = vmatpush.xpose.msk.msra.mxu1 %vm95_vm0, %v84_v21 }
  0x2e   :  { %232 = vmatpush.xpose.msra.mxu2 %v35_v22  ;;  %58 = vmatpush.xpose.msra.mxu0 %v35_v22 }
  0x2f   :  { %248 = vmatpush.xpose.msk.msra.mxu3 %vm95_vm0, %v83_v23  ;;  %214 = vmatpush.xpose.msk.msra.mxu1 %vm95_vm0, %v83_v23 }
  0x32   :  { %233 = vmatpush.xpose.msra.mxu2 %v34_v24  ;;  %59 = vmatpush.xpose.msra.mxu0 %v34_v24 }
  0x33   :  { %249 = vmatpush.xpose.msk.msra.mxu3 %vm95_vm0, %v82_v25  ;;  %215 = vmatpush.xpose.msk.msra.mxu1 %vm95_vm0, %v82_v25 }
  0x36   :  { %234 = vmatpush.xpose.msra.mxu2 %v33_v26  ;;  %60 = vmatpush.xpose.msra.mxu0 %v33_v26 }
  0x37   :  { %250 = vmatpush.xpose.msk.msra.mxu3 %vm95_vm0, %v81_v27  ;;  %216 = vmatpush.xpose.msk.msra.mxu1 %vm95_vm0, %v81_v27 }
  0x3a   :  { %235 = vmatpush.xpose.msra.mxu2 %v32_v28  ;;  %61 = vmatpush.xpose.msra.mxu0 %v32_v28 }
  0x3b   :  { %251 = vmatpush.xpose.msk.msra.mxu3 %vm95_vm0, %v80_v29  ;;  %217 = vmatpush.xpose.msk.msra.mxu1 %vm95_vm0, %v80_v29 }
  0x3e   :  { %236 = vmatpush.xpose.msra.mxu2 %v31_v30  ;;  %62 = vmatpush.xpose.msra.mxu0 %v31_v30 }
  0x3f   :  { %252 = vmatpush.xpose.msk.msra.mxu3 %vm95_vm0, %v79_v31  ;;  %218 = vmatpush.xpose.msk.msra.mxu1 %vm95_vm0, %v79_v31 }
  0x41   :  { %66 = vmatmul.f32.vlgmr.msra.gmra.mxu2 %v30_v32  ;;  %63 = vmatmul.f32.vlgmr.msra.gmra.mxu0 %v29_v33 }
  0x42   :  { %220 = vmatmul.msk.f32.vlgmr.msra.gmra.mxu3 %vm95_vm0, %v78_v34  ;;  %219 = vmatmul.msk.f32.vlgmr.msra.gmra.mxu1 %vm95_vm0, %v77_v35 }
  0xbe   :  { %v64_v36 = vpop.f32.mrf.mxu0 }
  0xbf   :  { %v167_v37 = vpop.f32.mrf.mxu1 }
  0xc0   :  { %v175_v39 = vadd.f32 %v167_v37, %v64_v36 }
  0xc2   :  { %v181_v40 = vadd.f32 %v257_v38, %v175_v39 }
  0xc4   :  { %v67_v41 = vpop.f32.mrf.mxu2  ;;  %183 = vst [vmem:[#allocation2] sm:$0xff] %v181_v40 }
  0xc5   :  { %v170_v42 = vpop.f32.mrf.mxu3 }
  0xc6   :  { %v176_v43 = vadd.f32 %v170_v42, %v67_v41 }
  0xc8   :  { %v182_v44 = vadd.f32 %v257_v38, %v176_v43 }
  0xca   :  { %184 = vst [vmem:[#allocation2 + $0x8] sm:$0xff] %v182_v44 }
  0xcb   :  { %197 = dma.vmem_to_hbm [thread:$0]  %s190_s15, 256, %s192_s17, [#allocation3], %s285_s18, %s285_s18, %s286_s19  }
  0xcc   :  { %282 = dma.done.wait [#allocation3], 256  }
  0xcd   :  { %283 = vsyncadd [#allocation3], 4294967040 }
  0xce   :  { %202 = vsyncpa [#allocation3], 1 }

</bundles_post_ra>
